<compile_context>
chip_gen: v7x
topology: tpu7x:2x2x1
jax: 0.10.0
libtpu: 0.0.40
codegen_flags: <defaults>
</compile_context>

<pallas_src>
import functools

import numpy as np
import jax
import jax.numpy as jnp
from jax import lax
from jax.experimental import pallas as pl
from jax.experimental.pallas import tpu as pltpu

_TM_CAP = 2048      # max rows per grid step (bounds staged-activation VMEM)
_ROW_ALIGN = 8      # sublane alignment for packed parameter rows


# ----------------------------------------------------------------------------
# Kernel
# ----------------------------------------------------------------------------
def _mlp_kernel(n_tanh, d_in, d_out, layout, x_ref, slab_ref, out_ref):
    """Feature-major MLP forward for one row tile.

    x_ref    : (tm, d_in)   natural batch-major input block
    slab_ref : (R, C)       all weights/biases packed into one constant slab
    out_ref  : (d_out, tm)  lane-dense output block

    layout[i] = (row_offset, n_rows, n_cols) of parameter i inside the slab,
    ordered [w0_eff, b0_eff, w1T, b1, ..., w_last, b_last].  Offsets are static
    Python ints, so slab slicing is just plain sub-window loads from VMEM.
    """
    def param(i):
        r, nr, nc = layout[i]
        return slab_ref[r:r + nr, 0:nc]

    x = x_ref[...]                                    # (tm, d_in)

    # ---- Layer 0 (input normalization already folded into w0/b0): contract
    # the last dims of (H1, d_in) and (tm, d_in) -> (H1, tm) feature-major,
    # consuming x in its natural layout with no explicit transpose/relayout.
    w0 = param(0)                                     # (H1, d_in)
    b0 = param(1)                                     # (H1, 1)
    h = lax.dot_general(w0, x,
                        dimension_numbers=(((1,), (1,)), ((), ())),
                        preferred_element_type=jnp.float32) + b0
    h = jnp.tanh(h)                                   # (H1, tm), lane-dense

    # ---- Hidden layers: MXU matmuls in feature-major layout (EUP tanh is the
    # eventual compute ceiling; the width-32 vmatmuls ride the free slot).
    for li in range(1, n_tanh):
        w = param(2 * li)                             # (H_out, H_in)
        b = param(2 * li + 1)                         # (H_out, 1)
        h = jnp.tanh(jnp.dot(w, h, preferred_element_type=jnp.float32) + b)

    # ---- Output layer: tiny d_out (=1) -> VPU multiply + sublane reduce,
    # producing a lane-dense (d_out, tm) block (no masked narrow stores).
    # TODO(synk): for large d_out use an MXU matmul here instead.
    wl = param(2 * n_tanh)                            # (H_last, d_out)
    bl = param(2 * n_tanh + 1)                        # (d_out, 1)
    rows = []
    for o in range(d_out):
        r = jnp.sum(wl[:, o:o + 1] * h, axis=0, keepdims=True)   # (1, tm)
        rows.append(r + bl[o:o + 1, 0:1])
    y = rows[0] if d_out == 1 else jnp.concatenate(rows, axis=0)
    out_ref[...] = y.astype(out_ref.dtype)


# ----------------------------------------------------------------------------
# Parameter preparation (hoisted out of the per-batch hot path)
# ----------------------------------------------------------------------------
def _pack_params(lb, ub, weights, biases):
    """Fold norm(x)=2*(x-lb)/(ub-lb)-1 into layer 0 and pack every weight and
    bias into a single f32 slab (one constant DMA / one VMEM buffer pair)."""
    lb = np.asarray(lb, np.float32).reshape(-1)
    ub = np.asarray(ub, np.float32).reshape(-1)
    d_in = lb.shape[0]

    ws = [np.asarray(w, np.float32) for w in weights]       # (in, out) each
    bs = [np.asarray(b, np.float32).reshape(-1) for b in biases]
    assert len(ws) >= 2, "expect at least one hidden layer"
    assert ws[0].shape[0] == d_in

    # norm(x) = x*scale + shift  =>  W0' = scale-scaled rows of W0,
    # b0' = shift @ W0 + b0, so layer0(x) == layer0_orig(norm(x)).
    scale = 2.0 / (ub - lb)
    shift = -lb * scale - 1.0
    w0_eff = (ws[0] * scale[:, None]).T                      # (H1, d_in)
    b0_eff = (ws[0].T @ shift + bs[0])[:, None]              # (H1, 1)

    params = [w0_eff, b0_eff]
    for k in range(1, len(ws) - 1):
        params.append(ws[k].T)                               # (H_out, H_in)
        params.append(bs[k][:, None])                        # (H_out, 1)
    params.append(ws[-1])                                    # (H_last, d_out)
    params.append(bs[-1][:, None])                           # (d_out, 1)

    slab_cols = max(p.shape[1] for p in params)
    layout, r = [], 0
    for p in params:
        nr, nc = p.shape
        layout.append((r, nr, nc))
        r += -(-nr // _ROW_ALIGN) * _ROW_ALIGN               # 8-row align
    slab = np.zeros((r, slab_cols), np.float32)
    for (ro, nr, nc), p in zip(layout, params):
        slab[ro:ro + nr, :nc] = p

    meta = dict(
        d_in=d_in,
        d_out=ws[-1].shape[1],
        n_tanh=len(ws) - 1,
        layout=tuple(layout),
        flops_per_row=int(2 * sum(w.size for w in ws)),
        trans_per_row=int(sum(w.shape[1] for w in ws[:-1])),
    )
    return jnp.asarray(slab), meta


def _min_parallel_grid():
    """>=2 parallel row tiles on multi-TensorCore chips (v4/v5p/v7x); grid=1
    is best on single-TC v5e/v6e where the grid is just a serial loop."""
    try:
        kind = (jax.devices()[0].device_kind or "").lower()
    except Exception:
        kind = ""
    return 2 if any(t in kind for t in ("v7", "v5p", "v4")) else 1


def _choose_tm(n, min_grid):
    """Pick the row tile: big enough to amortize the ~0.35us/step overhead,
    multiple of 128 (or == n) for aligned blocks, capped so staged activations
    stay tiny in VMEM."""
    if min_grid <= 1:
        if n <= _TM_CAP:
            return n                                  # grid = 1
        for tm in (2048, 1024, 512, 256, 128):
            if n % tm == 0:
                return tm
        return _TM_CAP                                # pad to a multiple
    for tm in (2048, 1024, 512, 256, 128):
        if (n + tm - 1) // tm >= min_grid:
            return tm
    return n                                          # tiny batch: one tile


# ----------------------------------------------------------------------------
# Forward
# ----------------------------------------------------------------------------
def _forward(x, slab, meta, min_grid):
    n, d_in = x.shape
    assert d_in == meta["d_in"]
    d_out, n_tanh = meta["d_out"], meta["n_tanh"]

    tm = _choose_tm(n, min_grid)
    n_pad = -(-n // tm) * tm
    xp = x.astype(jnp.float32)
    if n_pad != n:
        xp = jnp.pad(xp, ((0, n_pad - n), (0, 0)))    # ragged batches: pad rows

    kernel = functools.partial(_mlp_kernel, n_tanh, d_in, d_out, meta["layout"])
    out_t = pl.pallas_call(
        kernel,
        out_shape=jax.ShapeDtypeStruct((d_out, n_pad), jnp.float32),
        grid_spec=pltpu.PrefetchScalarGridSpec(
            num_scalar_prefetch=0,
            grid=(n_pad // tm,),
            in_specs=[
                # x in its natural layout; constant-index slab is DMA'd once.
                pl.BlockSpec((tm, d_in), lambda i: (i, 0)),
                pl.BlockSpec(slab.shape, lambda i: (0, 0)),
            ],
            out_specs=pl.BlockSpec((d_out, tm), lambda i: (0, i)),
        ),
        compiler_params=pltpu.CompilerParams(
            dimension_semantics=("parallel",)),
        cost_estimate=pl.CostEstimate(
            flops=meta["flops_per_row"] * n_pad,
            transcendentals=meta["trans_per_row"] * n_pad,
            bytes_accessed=int(4 * (n_pad * (d_in + d_out) + slab.size))),
    )(xp, slab)

    # (1, N) -> (N, 1) is a pure bitcast; only d_out > 1 needs a real transpose.
    out = out_t.reshape(n_pad, d_out) if d_out == 1 else out_t.T
    return out[:n] if n_pad != n else out


def make_pinn_forward(lb, ub, weights, biases):
    """Prepare/pack parameters once and return a jitted forward(x) -> (N, d_out)
    matching Net.forward.  weights[i]: (layers[i], layers[i+1]) (the transpose
    of PyTorch's (out, in) storage); biases[i]: (1, layers[i+1]) or (layers[i+1],).
    """
    slab, meta = _pack_params(lb, ub, weights, biases)
    min_grid = _min_parallel_grid()
    # TODO(synk): PINN losses need du/dx, u_xxx — pallas_call has no automatic
    # VJP/JVP, so add a custom_jvp (forward-mode) or use a pure-JAX path for
    # derivative terms before differentiating through this.
    return jax.jit(functools.partial(_forward, slab=slab, meta=meta,
                                     min_grid=min_grid))


def pinn_net_forward(x, lb, ub, weights, biases):
    """One-shot convenience wrapper (prep + forward)."""
    return make_pinn_forward(lb, ub, weights, biases)(x)


# ----------------------------------------------------------------------------
# Reference / demo
# ----------------------------------------------------------------------------
def _xavier_normal(key, fan_in, fan_out):
    std = (2.0 / (fan_in + fan_out)) ** 0.5
    return std * jax.random.normal(key, (fan_in, fan_out), dtype=jnp.float32)


def _torch_bias_init(key, fan_in, fan_out):
    bound = 1.0 / (fan_in ** 0.5)
    return jax.random.uniform(key, (1, fan_out), dtype=jnp.float32,
                              minval=-bound, maxval=bound)


def _reference_forward(x, lb, ub, weights, biases):
    h = 2.0 * (x - lb.reshape(1, -1)) / (ub - lb).reshape(1, -1) - 1.0
    for i in range(len(weights) - 1):
        h = jnp.tanh(h @ weights[i] + biases[i])
    return h @ weights[-1] + biases[-1]


if __name__ == "__main__":
    # KdV PINN: input (x, t) -> scalar u; small hidden widths.
    layers = [2, 32, 32, 32, 1]
    lb = jnp.array([-1.0, 0.0], dtype=jnp.float32)
    ub = jnp.array([1.0, 1.0], dtype=jnp.float32)

    key = jax.random.PRNGKey(0)
    keys = jax.random.split(key, 2 * (len(layers) - 1) + 1)

    weights, biases = [], []
    for i in range(len(layers) - 1):
        weights.append(_xavier_normal(keys[2 * i], layers[i], layers[i + 1]))
        biases.append(_torch_bias_init(keys[2 * i + 1], layers[i],
                                       layers[i + 1]))

    n = 512   # collocation points
    x = jax.random.uniform(keys[-1], (n, layers[0]), dtype=jnp.float32,
                           minval=-1.0, maxval=1.0)

    forward = make_pinn_forward(lb, ub, weights, biases)   # params prepped once
    out = jax.block_until_ready(forward(x))

    ref = _reference_forward(x, lb, ub, weights, biases)
    assert out.shape == (n, layers[-1])
    assert jnp.allclose(out, ref, atol=5e-5, rtol=5e-5), (
        "max abs diff = %g" % float(jnp.max(jnp.abs(out - ref))))

    print("KERNEL_OK")
</pallas_src>

<mosaic_0001>
module attributes {stable_mosaic.version = 11 : i64} {
  func.func @_mlp_kernel(%arg0: i32, %arg1: memref<512x2xf32, #tpu.memory_space<vmem>>, %arg2: memref<232x32xf32, #tpu.memory_space<vmem>>, %arg3: memref<1x512xf32, #tpu.memory_space<vmem>>) attributes {dimension_semantics = [#tpu.dimension_semantics<parallel>], iteration_bounds = array<i64: 1>, scalar_prefetch = 0 : i64, scratch_operands = 0 : i64, tpu.core_type = #tpu.core_type<tc>, window_params = [{transform_indices = @transform_0, window_bounds = array<i64: 512, 2>}, {pipeline_mode = #tpu.pipeline_mode<synchronous>, transform_indices = @transform_1, window_bounds = array<i64: 232, 32>}, {transform_indices = @transform_2, window_bounds = array<i64: 1, 512>}]} {
    %c0 = arith.constant 0 : index
    %c0_0 = arith.constant 0 : index
    %0 = vector.load %arg1[%c0, %c0_0] : memref<512x2xf32, #tpu.memory_space<vmem>>, vector<512x2xf32>
    %c0_1 = arith.constant 0 : index
    %c0_2 = arith.constant 0 : index
    %1 = vector.load %arg2[%c0_1, %c0_2] : memref<232x32xf32, #tpu.memory_space<vmem>>, vector<32x2xf32>
    %c32 = arith.constant 32 : index
    %c0_3 = arith.constant 0 : index
    %2 = vector.load %arg2[%c32, %c0_3] : memref<232x32xf32, #tpu.memory_space<vmem>>, vector<32x1xf32>
    %cst = arith.constant dense<0.000000e+00> : vector<32x512xf32>
    %3 = tpu.matmul %1, %0, %cst {dimension_numbers = #tpu.dot_dimension_numbers<[1], [1], [0], [0], [0, 0, 1, 0], [], []>} : vector<32x2xf32>, vector<512x2xf32>, vector<32x512xf32> -> vector<32x512xf32>
    %4 = vector.broadcast %2 : vector<32x1xf32> to vector<32x512xf32>
    %5 = arith.addf %3, %4 : vector<32x512xf32>
    %6 = math.tanh %5 : vector<32x512xf32>
    %c64 = arith.constant 64 : index
    %c0_4 = arith.constant 0 : index
    %7 = vector.load %arg2[%c64, %c0_4] : memref<232x32xf32, #tpu.memory_space<vmem>>, vector<32x32xf32>
    %c96 = arith.constant 96 : index
    %c0_5 = arith.constant 0 : index
    %8 = vector.load %arg2[%c96, %c0_5] : memref<232x32xf32, #tpu.memory_space<vmem>>, vector<32x1xf32>
    %cst_6 = arith.constant dense<0.000000e+00> : vector<32x512xf32>
    %9 = tpu.matmul %7, %6, %cst_6 {dimension_numbers = #tpu.dot_dimension_numbers<[1], [0], [0], [1], [0, 0, 1, 1], [], []>} : vector<32x32xf32>, vector<32x512xf32>, vector<32x512xf32> -> vector<32x512xf32>
    %10 = vector.broadcast %8 : vector<32x1xf32> to vector<32x512xf32>
    %11 = arith.addf %9, %10 : vector<32x512xf32>
    %12 = math.tanh %11 : vector<32x512xf32>
    %c128 = arith.constant 128 : index
    %c0_7 = arith.constant 0 : index
    %13 = vector.load %arg2[%c128, %c0_7] : memref<232x32xf32, #tpu.memory_space<vmem>>, vector<32x32xf32>
    %c160 = arith.constant 160 : index
    %c0_8 = arith.constant 0 : index
    %14 = vector.load %arg2[%c160, %c0_8] : memref<232x32xf32, #tpu.memory_space<vmem>>, vector<32x1xf32>
    %cst_9 = arith.constant dense<0.000000e+00> : vector<32x512xf32>
    %15 = tpu.matmul %13, %12, %cst_9 {dimension_numbers = #tpu.dot_dimension_numbers<[1], [0], [0], [1], [0, 0, 1, 1], [], []>} : vector<32x32xf32>, vector<32x512xf32>, vector<32x512xf32> -> vector<32x512xf32>
    %16 = vector.broadcast %14 : vector<32x1xf32> to vector<32x512xf32>
    %17 = arith.addf %15, %16 : vector<32x512xf32>
    %18 = math.tanh %17 : vector<32x512xf32>
    %c192 = arith.constant 192 : index
    %c0_10 = arith.constant 0 : index
    %19 = vector.load %arg2[%c192, %c0_10] : memref<232x32xf32, #tpu.memory_space<vmem>>, vector<32x1xf32>
    %c224 = arith.constant 224 : index
    %c0_11 = arith.constant 0 : index
    %20 = vector.load %arg2[%c224, %c0_11] : memref<232x32xf32, #tpu.memory_space<vmem>>, vector<1x1xf32>
    %21 = vector.broadcast %19 : vector<32x1xf32> to vector<32x512xf32>
    %22 = arith.mulf %21, %18 : vector<32x512xf32>
    %cst_12 = arith.constant dense<0.000000e+00> : vector<512xf32>
    %23 = vector.multi_reduction <add>, %22, %cst_12 [0] : vector<32x512xf32> to vector<512xf32>
    %24 = vector.shape_cast %23 : vector<512xf32> to vector<1x512xf32>
    %25 = vector.broadcast %20 : vector<1x1xf32> to vector<1x512xf32>
    %26 = arith.addf %24, %25 : vector<1x512xf32>
    %c0_13 = arith.constant 0 : index
    %c0_14 = arith.constant 0 : index
    %27 = vector.load %arg3[%c0_13, %c0_14] : memref<1x512xf32, #tpu.memory_space<vmem>>, vector<1x512xf32>
    tpu.vector_store %arg3[%c0_13, %c0_14], %26 {strides = array<i32>} : memref<1x512xf32, #tpu.memory_space<vmem>>, vector<1x512xf32>,
    return
  }
  func.func @transform_0(%arg0: i32) -> (i32, i32) {
    %c0_i32 = arith.constant 0 : i32
    %c0_i32_0 = arith.constant 0 : i32
    return %arg0, %c0_i32 : i32, i32
  }
  func.func @transform_1(%arg0: i32) -> (i32, i32) {
    %c0_i32 = arith.constant 0 : i32
    %c0_i32_0 = arith.constant 0 : i32
    %c0_i32_1 = arith.constant 0 : i32
    return %c0_i32, %c0_i32_0 : i32, i32
  }
  func.func @transform_2(%arg0: i32) -> (i32, i32) {
    %c0_i32 = arith.constant 0 : i32
    %c0_i32_0 = arith.constant 0 : i32
    return %c0_i32, %arg0 : i32, i32
  }
}

</mosaic_0001>

<bundles_post_ra>
// kernel: _forward.1
= control target key start
LH: loop header
LB: loop body
LE: loop exit
PB: predicated region body
PF: predicated region fallthrough
CT: control target
= control target key end

     0   :  { %vm104_vm0 = vcmask 15360   ;;  %v1528_v7 = vmov 0   ;;  %s1962_s0 = inlined_call_operand.vmem [shape: f32[512,2], index: 0, kind: input, shape index: {}]   ;;  %s1963_s1 = inlined_call_operand.vmem [shape: f32[232,32], index: 1, kind: input, shape index: {}]   ;;  %s1964_s2 = inlined_call_operand.hbm [shape: f32[1,512], index: 2, kind: output, shape index: {}]  }
   0x1   :  { %v28_v0 = vld [vmem:[%s1962_s0 + $0x80] sm:$0xff]  ;;  %v29_v1 = vld [vmem:[%s1962_s0 + $0x88] sm:$0xff]  ;;  %vm1558_vm1 = vmpackc.low %vm104_vm0, %vm104_vm0  ;;  %1406 = vset.pattern.permute.xlu0 %v1528_v7  ;;  %1407 = vset.pattern.permute.xlu1 %v1528_v7 }
   0x2   :  { %v60_v2 = vld [vmem:[%s1962_s0 + $0x180] sm:$0xff]  ;;  %v1274_v3 = vpack.c.bf16 %v29_v1, %v28_v0  ;;  %v61_v5 = vld [vmem:[%s1962_s0 + $0x188] sm:$0xff]  ;;  %v30_v14 = vld [vmem:[%s1962_s0 + $0x90] sm:$0xff] }
   0x3   :  { %v12_v6 = vld [vmem:[%s1962_s0] sm:$0xff]  ;;  %v1322_v8 = vpack.c.bf16 %v61_v5, %v60_v2  ;;  %v13_v9 = vld [vmem:[%s1962_s0 + $0x8] sm:$0xff]  ;;  %v31_v15 = vld [vmem:[%s1962_s0 + $0x98] sm:$0xff] }
   0x4   :  { %v44_v10 = vld [vmem:[%s1962_s0 + $0x100] sm:$0xff]  ;;  %v45_v11 = vld [vmem:[%s1962_s0 + $0x108] sm:$0xff]  ;;  %1276 = vmatprep.subr.msk.bf16.mxu0 %vm1558_vm1, %v1274_v3  ;;  %v1277_v12 = vpack.c.bf16 %v13_v9, %v12_v6  ;;  %v62_v16 = vld [vmem:[%s1962_s0 + $0x190] sm:$0xff]  ;;  %v1280_v17 = vpack.c.bf16 %v31_v15, %v30_v14 }
   0x5   :  { %v1325_v13 = vpack.c.bf16 %v45_v11, %v44_v10  ;;  %1324 = vmatprep.subr.msk.bf16.mxu1 %vm1558_vm1, %v1322_v8  ;;  %v63_v18 = vld [vmem:[%s1962_s0 + $0x198] sm:$0xff]  ;;  %v14_v20 = vld [vmem:[%s1962_s0 + $0x10] sm:$0xff]  ;;  %v32_v24 = vld [vmem:[%s1962_s0 + $0xa0] sm:$0xff] }
   0x6   :  { %1279 = vmatpush3.bf16.xpose.msk.msra.mxu0 %vm1558_vm1, %v1277_v12  ;;  %v1328_v19 = vpack.c.bf16 %v63_v18, %v62_v16  ;;  %v15_v21 = vld [vmem:[%s1962_s0 + $0x18] sm:$0xff]  ;;  %v46_v22 = vld [vmem:[%s1962_s0 + $0x110] sm:$0xff]  ;;  %v33_v25 = vld [vmem:[%s1962_s0 + $0xa8] sm:$0xff] }
   0x7   :  { %1327 = vmatpush3.bf16.xpose.msk.msra.mxu1 %vm1558_vm1, %v1325_v13  ;;  %1282 = vmatprep.subr.msk.bf16.mxu0 %vm1558_vm1, %v1280_v17  ;;  %v47_v23 = vld [vmem:[%s1962_s0 + $0x118] sm:$0xff]  ;;  %v64_v26 = vld [vmem:[%s1962_s0 + $0x1a0] sm:$0xff]  ;;  %v65_v27 = vld [vmem:[%s1962_s0 + $0x1a8] sm:$0xff]  ;;  %v1283_v28 = vpack.c.bf16 %v15_v21, %v14_v20  ;;  %v1286_v30 = vpack.c.bf16 %v33_v25, %v32_v24 }
   0x8   :  { %1330 = vmatprep.subr.msk.bf16.mxu1 %vm1558_vm1, %v1328_v19  ;;  %v1331_v29 = vpack.c.bf16 %v47_v23, %v46_v22  ;;  %v1334_v31 = vpack.c.bf16 %v65_v27, %v64_v26  ;;  %v16_v32 = vld [vmem:[%s1962_s0 + $0x20] sm:$0xff]  ;;  %v17_v33 = vld [vmem:[%s1962_s0 + $0x28] sm:$0xff]  ;;  %v34_v36 = vld [vmem:[%s1962_s0 + $0xb0] sm:$0xff] }
   0x9   :  { %v48_v34 = vld [vmem:[%s1962_s0 + $0x120] sm:$0xff]  ;;  %v49_v35 = vld [vmem:[%s1962_s0 + $0x128] sm:$0xff]  ;;  %v35_v37 = vld [vmem:[%s1962_s0 + $0xb8] sm:$0xff]  ;;  %v1289_v40 = vpack.c.bf16 %v17_v33, %v16_v32 }
   0xa   :  { %v66_v38 = vld [vmem:[%s1962_s0 + $0x1b0] sm:$0xff]  ;;  %v67_v39 = vld [vmem:[%s1962_s0 + $0x1b8] sm:$0xff]  ;;  %v1337_v41 = vpack.c.bf16 %v49_v35, %v48_v34  ;;  %v1292_v42 = vpack.c.bf16 %v35_v37, %v34_v36  ;;  %v1673_v47 = vld [vmem:[%s1963_s1] sm:$0xff] }
   0xb   :  { %v1340_v43 = vpack.c.bf16 %v67_v39, %v66_v38  ;;  %v18_v44 = vld [vmem:[%s1962_s0 + $0x30] sm:$0xff]  ;;  %v19_v45 = vld [vmem:[%s1962_s0 + $0x38] sm:$0xff]  ;;  %v36_v49 = vld [vmem:[%s1962_s0 + $0xc0] sm:$0xff]  ;;  %1226 = vmatprep.mubr.msk.f32.mxu0 %vm104_vm0, %v1673_v47  ;;  %1266 = vmatprep.mubr.msk.f32.mxu1 %vm104_vm0, %v1673_v47 }
   0xc   :  { %v50_v46 = vld [vmem:[%s1962_s0 + $0x130] sm:$0xff]  ;;  %v51_v48 = vld [vmem:[%s1962_s0 + $0x138] sm:$0xff]  ;;  %v37_v50 = vld [vmem:[%s1962_s0 + $0xc8] sm:$0xff]  ;;  %v1295_v55 = vpack.c.bf16 %v19_v45, %v18_v44 }
   0xd   :  { %v68_v51 = vld [vmem:[%s1962_s0 + $0x1c0] sm:$0xff]  ;;  %v69_v52 = vld [vmem:[%s1962_s0 + $0x1c8] sm:$0xff]  ;;  %v82_v54 = vld [vmem:[%s1963_s1 + $0x30] sm:$0xff]  ;;  %v1343_v56 = vpack.c.bf16 %v51_v48, %v50_v46  ;;  %v1298_v58 = vpack.c.bf16 %v37_v50, %v36_v49 }
   0xe   :  { %1285 = vmatpush3.bf16.xpose.msk.msra.mxu0 %vm1558_vm1, %v1283_v28  ;;  %v80_v53 = vld [vmem:[%s1963_s1 + $0x20] sm:$0xff]  ;;  %v81_v57 = vld [vmem:[%s1963_s1 + $0x28] sm:$0xff]  ;;  %96 = vperm.xlu1 %1407, %v82_v54   ;;  %v1346_v59 = vpack.c.bf16 %v69_v52, %v68_v51  ;;  %v83_v60 = vld [vmem:[%s1963_s1 + $0x38] sm:$0xff] }
   0xf   :  { %1333 = vmatpush3.bf16.xpose.msk.msra.mxu1 %vm1558_vm1, %v1331_v29  ;;  %1288 = vmatprep.subr.msk.bf16.mxu0 %vm1558_vm1, %v1286_v30 }
  0x10   :  { %1336 = vmatprep.subr.msk.bf16.mxu1 %vm1558_vm1, %v1334_v31  ;;  %86 = vperm.xlu0 %1406, %v80_v53  }
  0x14   :  { %91 = vperm.xlu0 %1406, %v81_v57  }
  0x16   :  { %1291 = vmatpush3.bf16.xpose.msk.msra.mxu0 %vm1558_vm1, %v1289_v40 }
  0x17   :  { %1339 = vmatpush3.bf16.xpose.msk.msra.mxu1 %vm1558_vm1, %v1337_v41  ;;  %1294 = vmatprep.subr.msk.bf16.mxu0 %vm1558_vm1, %v1292_v42 }
  0x18   :  { %1342 = vmatprep.subr.msk.bf16.mxu1 %vm1558_vm1, %v1340_v43 }
  0x19   :  { %7 = vsyncpa [#allocation3], 0  ;;  %v20_v61 = vld [vmem:[%s1962_s0 + $0x40] sm:$0xff]  ;;  %v21_v62 = vld [vmem:[%s1962_s0 + $0x48] sm:$0xff]  ;;  %101 = vperm.xlu1 %1407, %v83_v60   ;;  %vm531_vm2 = vcmask 261120  }
  0x1a   :  { %v507_v63 = vld [vmem:[%s1963_s1 + $0x60] sm:$0xff]  ;;  %v53_v1 = vld [vmem:[%s1962_s0 + $0x148] sm:$0xff]  ;;  %v38_v2 = vld [vmem:[%s1962_s0 + $0xd0] sm:$0xff]  ;;  %v1301_v8 = vpack.c.bf16 %v21_v62, %v20_v61 }
  0x1b   :  { %v52_v0 = vld [vmem:[%s1962_s0 + $0x140] sm:$0xff]  ;;  %v39_v3 = vld [vmem:[%s1962_s0 + $0xd8] sm:$0xff]  ;;  %v70_v5 = vld [vmem:[%s1962_s0 + $0x1d0] sm:$0xff]  ;;  %513 = vperm.xlu0 %1406, %v507_v63  }
  0x1c   :  { %v71_v6 = vld [vmem:[%s1962_s0 + $0x1d8] sm:$0xff]  ;;  %v508_v7 = vld [vmem:[%s1963_s1 + $0x68] sm:$0xff]  ;;  %v1349_v9 = vpack.c.bf16 %v53_v1, %v52_v0  ;;  %v509_v10 = vld [vmem:[%s1963_s1 + $0x70] sm:$0xff]  ;;  %v1304_v11 = vpack.c.bf16 %v39_v3, %v38_v2 }
  0x1d   :  { %v1352_v12 = vpack.c.bf16 %v71_v6, %v70_v5  ;;  %518 = vperm.xlu1 %1407, %v508_v7   ;;  %v510_v13 = vld [vmem:[%s1963_s1 + $0x78] sm:$0xff]  ;;  %v22_v14 = vld [vmem:[%s1962_s0 + $0x50] sm:$0xff]  ;;  %v742_v16 = vld [vmem:[%s1963_s1 + $0xa0] sm:$0xff] }
  0x1e   :  { %1297 = vmatpush3.bf16.xpose.msk.msra.mxu0 %vm1558_vm1, %v1295_v55  ;;  %v23_v15 = vld [vmem:[%s1962_s0 + $0x58] sm:$0xff]  ;;  %v54_v17 = vld [vmem:[%s1962_s0 + $0x150] sm:$0xff]  ;;  %v40_v19 = vld [vmem:[%s1962_s0 + $0xe0] sm:$0xff] }
  0x1f   :  { %1345 = vmatpush3.bf16.xpose.msk.msra.mxu1 %vm1558_vm1, %v1343_v56  ;;  %1300 = vmatprep.subr.msk.bf16.mxu0 %vm1558_vm1, %v1298_v58  ;;  %v55_v18 = vld [vmem:[%s1962_s0 + $0x158] sm:$0xff]  ;;  %v41_v20 = vld [vmem:[%s1962_s0 + $0xe8] sm:$0xff]  ;;  %v72_v21 = vld [vmem:[%s1962_s0 + $0x1e0] sm:$0xff]  ;;  %v1307_v24 = vpack.c.bf16 %v23_v15, %v22_v14 }
  0x20   :  { %1348 = vmatprep.subr.msk.bf16.mxu1 %vm1558_vm1, %v1346_v59  ;;  %523 = vperm.xlu0 %1406, %v509_v10   ;;  %v73_v22 = vld [vmem:[%s1962_s0 + $0x1e8] sm:$0xff]  ;;  %v1355_v25 = vpack.c.bf16 %v55_v18, %v54_v17  ;;  %v744_v26 = vld [vmem:[%s1963_s1 + $0xb0] sm:$0xff]  ;;  %v1310_v27 = vpack.c.bf16 %v41_v20, %v40_v19  ;;  %v745_v29 = vld [vmem:[%s1963_s1 + $0xb8] sm:$0xff] }
  0x21   :  { %528 = vperm.xlu1 %1407, %v510_v13   ;;  %v743_v23 = vld [vmem:[%s1963_s1 + $0xa8] sm:$0xff]  ;;  %v1358_v28 = vpack.c.bf16 %v73_v22, %v72_v21  ;;  %v24_v30 = vld [vmem:[%s1962_s0 + $0x60] sm:$0xff]  ;;  %v42_v35 = vld [vmem:[%s1962_s0 + $0xf0] sm:$0xff] }
  0x22   :  { %v25_v31 = vld [vmem:[%s1962_s0 + $0x68] sm:$0xff]  ;;  %v972_v32 = vld [vmem:[%s1963_s1 + $0xc0] sm:$0xff]  ;;  %v43_v36 = vld [vmem:[%s1962_s0 + $0xf8] sm:$0xff] }
  0x23   :  { %v56_v33 = vld [vmem:[%s1962_s0 + $0x160] sm:$0xff]  ;;  %v57_v34 = vld [vmem:[%s1962_s0 + $0x168] sm:$0xff]  ;;  %v74_v37 = vld [vmem:[%s1962_s0 + $0x1f0] sm:$0xff]  ;;  %v1313_v40 = vpack.c.bf16 %v25_v31, %v24_v30  ;;  %v1316_v43 = vpack.c.bf16 %v43_v36, %v42_v35 }
  0x24   :  { %748 = vperm.xlu0 %1406, %v742_v16   ;;  %v75_v38 = vld [vmem:[%s1962_s0 + $0x1f8] sm:$0xff]  ;;  %v973_v39 = vld [vmem:[%s1963_s1 + $0xc8] sm:$0xff]  ;;  %v1361_v41 = vpack.c.bf16 %v57_v34, %v56_v33  ;;  %v974_v42 = vld [vmem:[%s1963_s1 + $0xd0] sm:$0xff] }
  0x25   :  { %753 = vperm.xlu1 %1407, %v743_v23   ;;  %v1364_v44 = vpack.c.bf16 %v75_v38, %v74_v37  ;;  %v975_v45 = vld [vmem:[%s1963_s1 + $0xd8] sm:$0xff]  ;;  %v26_v46 = vld [vmem:[%s1962_s0 + $0x70] sm:$0xff]  ;;  %v976_v48 = vld [vmem:[%s1963_s1 + $0xe0] sm:$0x1] }
  0x26   :  { %1303 = vmatpush3.bf16.xpose.msk.msra.mxu0 %vm1558_vm1, %v1301_v8  ;;  %v27_v49 = vld [vmem:[%s1962_s0 + $0x78] sm:$0xff]  ;;  %v58_v50 = vld [vmem:[%s1962_s0 + $0x170] sm:$0xff]  ;;  %v77_v54 = vld [vmem:[%s1963_s1 + $0x8] sm:$0xff] }
  0x27   :  { %1351 = vmatpush3.bf16.xpose.msk.msra.mxu1 %vm1558_vm1, %v1349_v9  ;;  %1306 = vmatprep.subr.msk.bf16.mxu0 %vm1558_vm1, %v1304_v11  ;;  %v59_v51 = vld [vmem:[%s1962_s0 + $0x178] sm:$0xff]  ;;  %v1319_v52 = vpack.c.bf16 %v27_v49, %v26_v46  ;;  %v78_v55 = vld [vmem:[%s1963_s1 + $0x10] sm:$0xff] }
  0x28   :  { %1354 = vmatprep.subr.msk.bf16.mxu1 %vm1558_vm1, %v1352_v12  ;;  %758 = vperm.xlu0 %1406, %v744_v26   ;;  %v1367_v53 = vpack.c.bf16 %v59_v51, %v58_v50  ;;  %v79_v4 = vld [vmem:[%s1963_s1 + $0x18] sm:$0xff] }
  0x29   :  { %763 = vperm.xlu1 %1407, %v745_v29  }
  0x2c   :  { %979 = vperm.xlu0 %1406, %v972_v32  }
  0x2d   :  { %984 = vperm.xlu1 %1407, %v973_v39  }
  0x2e   :  { %1309 = vmatpush3.bf16.xpose.msk.msra.mxu0 %vm1558_vm1, %v1307_v24 }
  0x2f   :  { %1357 = vmatpush3.bf16.xpose.msk.msra.mxu1 %vm1558_vm1, %v1355_v25  ;;  %1312 = vmatprep.subr.msk.bf16.mxu0 %vm1558_vm1, %v1310_v27 }
  0x30   :  { %1360 = vmatprep.subr.msk.bf16.mxu1 %vm1558_vm1, %v1358_v28  ;;  %989 = vperm.xlu0 %1406, %v974_v42  }
  0x31   :  { %994 = vperm.xlu1 %1407, %v975_v45  }
  0x34   :  { %1051 = vperm.xlu0 %1406, %v976_v48  }
  0x36   :  { %1315 = vmatpush3.bf16.xpose.msk.msra.mxu0 %vm1558_vm1, %v1313_v40 }
  0x37   :  { %1363 = vmatpush3.bf16.xpose.msk.msra.mxu1 %vm1558_vm1, %v1361_v41  ;;  %1318 = vmatprep.subr.msk.bf16.mxu0 %vm1558_vm1, %v1316_v43 }
  0x38   :  { %1366 = vmatprep.subr.msk.bf16.mxu1 %vm1558_vm1, %v1364_v44 }
  0x3e   :  { %1321 = vmatpush3.bf16.xpose.msk.msra.mxu0 %vm1558_vm1, %v1319_v52 }
  0x3f   :  { %1369 = vmatpush3.bf16.xpose.msk.msra.mxu1 %vm1558_vm1, %v1367_v53 }
  0x45   :  { %1227 = vmatmul.mubr.msk.f32.vlgmr.msra.gmra.mrb[0].mxu0 %vm104_vm0, %v1673_v47 }
  0x46   :  { %1267 = vmatmul.mubr.msk.f32.vlgmr.msra.gmra.mrb[0].mxu1 %vm104_vm0, %v1673_v47  ;;  %1228 = vmatprep.mubr.msk.f32.mxu0 %vm104_vm0, %v77_v54  ;;  %v1529_v47 = vmov 0.0  }
  0x47   :  { %1268 = vmatprep.mubr.msk.f32.mxu1 %vm104_vm0, %v77_v54 }
  0x49   :  { %1229 = vmatmul.mubr.msk.f32.gmra.mrb[2].mxu0 %vm104_vm0, %v77_v54 }
  0x4a   :  { %1269 = vmatmul.mubr.msk.f32.gmra.mrb[2].mxu1 %vm104_vm0, %v77_v54  ;;  %1230 = vmatprep.mubr.msk.f32.mxu0 %vm104_vm0, %v78_v55  ;;  %v503_v54 = vld [vmem:[%s1963_s1 + $0x40] sm:$0xff] }
  0x4b   :  { %1270 = vmatprep.mubr.msk.f32.mxu1 %vm104_vm0, %v78_v55 }
  0x4d   :  { %1231 = vmatmul.mubr.msk.f32.gmra.mrb[4].mxu0 %vm104_vm0, %v78_v55 }
  0x4e   :  { %1271 = vmatmul.mubr.msk.f32.gmra.mrb[4].mxu1 %vm104_vm0, %v78_v55  ;;  %1232 = vmatprep.mubr.msk.f32.mxu0 %vm104_vm0, %v79_v4  ;;  %v504_v55 = vld [vmem:[%s1963_s1 + $0x48] sm:$0xff] }
  0x4f   :  { %1272 = vmatprep.mubr.msk.f32.mxu1 %vm104_vm0, %v79_v4 }
  0x51   :  { %1233 = vmatmul.mubr.msk.f32.gmra.mrb[6].mxu0 %vm104_vm0, %v79_v4 }
  0x52   :  { %1273 = vmatmul.mubr.msk.f32.gmra.mrb[6].mxu1 %vm104_vm0, %v79_v4  ;;  %608 = vmatprep.mubr.f32.mxu0 %v1529_v47  ;;  %v505_v4 = vld [vmem:[%s1963_s1 + $0x50] sm:$0xff] }
  0x53   :  { %697 = vmatprep.mubr.f32.mxu1 %v1529_v47 }
  0x8d   :  { %v97_v2 = vpop.permute.xlu1 %96 }
  0x8f   :  { %v87_v56 = vpop.permute.xlu0 %86 }
  0x93   :  { %v92_v1 = vpop.permute.xlu0 %91 }
  0x98   :  { %v102_v20 = vpop.permute.xlu1 %101 }
 0x118   :  { %v375_v57 = vpop.f32.mrb[0].mxu0 }
 0x119   :  { %v464_v58 = vpop.f32.mrb[0].mxu1  ;;  %v376_v59 = vadd.f32 %v375_v57, %v87_v56  ;;  %v377_v61 = vpop.f32.mrb[1].mxu0 }
 0x11a   :  { %v465_v60 = vadd.f32 %v464_v58, %v87_v56  ;;  %v466_v62 = vpop.f32.mrb[1].mxu1  ;;  %v378_v63 = vadd.f32 %v377_v61, %v87_v56  ;;  %v514_v57 = vpop.permute.xlu0 %513 }
 0x11b   :  { %v467_v0 = vadd.f32 %v466_v62, %v87_v56  ;;  %1408 = vtanh.f32 %v376_v59  ;;  %v506_v56 = vld [vmem:[%s1963_s1 + $0x58] sm:$0xff] }
 0x11c   :  { %1410 = vtanh.f32 %v465_v60  ;;  %v381_v3 = vpop.f32.mrb[2].mxu0 }
 0x11d   :  { %v470_v5 = vpop.f32.mrb[2].mxu1  ;;  %1412 = vtanh.f32 %v378_v63  ;;  %v382_v6 = vadd.f32 %v381_v3, %v92_v1  ;;  %v383_v8 = vpop.f32.mrb[3].mxu0 }
 0x11e   :  { %v471_v7 = vadd.f32 %v470_v5, %v92_v1  ;;  %v472_v9 = vpop.f32.mrb[3].mxu1  ;;  %1414 = vtanh.f32 %v467_v0  ;;  %v384_v10 = vadd.f32 %v383_v8, %v92_v1 }
 0x11f   :  { %v473_v11 = vadd.f32 %v472_v9, %v92_v1  ;;  %1416 = vtanh.f32 %v382_v6 }
 0x120   :  { %1418 = vtanh.f32 %v471_v7  ;;  %v387_v12 = vpop.f32.mrb[4].mxu0 }
 0x121   :  { %v476_v13 = vpop.f32.mrb[4].mxu1  ;;  %1420 = vtanh.f32 %v384_v10  ;;  %v388_v14 = vadd.f32 %v387_v12, %v97_v2  ;;  %v389_v16 = vpop.f32.mrb[5].mxu0 }
 0x122   :  { %v477_v15 = vadd.f32 %v476_v13, %v97_v2  ;;  %v478_v17 = vpop.f32.mrb[5].mxu1  ;;  %1422 = vtanh.f32 %v473_v11  ;;  %v390_v18 = vadd.f32 %v389_v16, %v97_v2  ;;  %v524_v12 = vpop.permute.xlu0 %523 }
 0x123   :  { %v479_v19 = vadd.f32 %v478_v17, %v97_v2  ;;  %1424 = vtanh.f32 %v388_v14  ;;  %v519_v2 = vpop.permute.xlu1 %518 }
 0x124   :  { %1426 = vtanh.f32 %v477_v15  ;;  %v393_v21 = vpop.f32.mrb[6].mxu0 }
 0x125   :  { %v482_v22 = vpop.f32.mrb[6].mxu1  ;;  %v1409_v23 = vpop.eup %1408  ;;  %1428 = vtanh.f32 %v390_v18  ;;  %v394_v24 = vadd.f32 %v393_v21, %v102_v20 }
 0x126   :  { %v483_v25 = vadd.f32 %v482_v22, %v102_v20  ;;  %v395_v26 = vpop.f32.mrb[7].mxu0  ;;  %v484_v27 = vpop.f32.mrb[7].mxu1  ;;  %1430 = vtanh.f32 %v479_v19 }
 0x127   :  { %v1411_v28 = vpop.eup %1410  ;;  %v396_v29 = vadd.f32 %v395_v26, %v102_v20  ;;  %v485_v30 = vadd.f32 %v484_v27, %v102_v20  ;;  %1432 = vtanh.f32 %v394_v24  ;;  %v529_v21 = vpop.permute.xlu1 %528 }
 0x128   :  { %v1413_v31 = vpop.eup %1412  ;;  %1434 = vtanh.f32 %v483_v25 }
 0x129   :  { %v1415_v32 = vpop.eup %1414  ;;  %1436 = vtanh.f32 %v396_v29 }
 0x12a   :  { %v1417_v33 = vpop.eup %1416  ;;  %1438 = vtanh.f32 %v485_v30 }
 0x12b   :  { %v1419_v34 = vpop.eup %1418  ;;  %v1372_v35 = vpack.c.bf16 %v1417_v33, %v1409_v23 }
 0x12c   :  { %v1421_v36 = vpop.eup %1420  ;;  %v1380_v37 = vpack.c.bf16 %v1419_v34, %v1411_v28 }
 0x12d   :  { %v1423_v38 = vpop.eup %1422  ;;  %v1370_v39 = vpack.c.bf16 %v1421_v36, %v1413_v31 }
 0x12e   :  { %v1425_v40 = vpop.eup %1424  ;;  %v1378_v41 = vpack.c.bf16 %v1423_v38, %v1415_v32 }
 0x12f   :  { %v1427_v42 = vpop.eup %1426  ;;  %1371 = vmatprep.subr.bf16.mxu0 %v1370_v39 }
 0x130   :  { %v1429_v43 = vpop.eup %1428  ;;  %1379 = vmatprep.subr.bf16.mxu1 %v1378_v41  ;;  %1373 = vmatpush1.bf16.msra.mxu0 %v1372_v35 }
 0x131   :  { %v1431_v44 = vpop.eup %1430  ;;  %1381 = vmatpush1.bf16.msra.mxu1 %v1380_v37 }
 0x132   :  { %v1433_v45 = vpop.eup %1432 }
 0x133   :  { %v1435_v46 = vpop.eup %1434  ;;  %v1376_v48 = vpack.c.bf16 %v1433_v45, %v1425_v40 }
 0x134   :  { %v1437_v49 = vpop.eup %1436  ;;  %v1384_v50 = vpack.c.bf16 %v1435_v46, %v1427_v42 }
 0x135   :  { %v1439_v51 = vpop.eup %1438  ;;  %v1374_v52 = vpack.c.bf16 %v1437_v49, %v1429_v43 }
 0x136   :  { %v1382_v53 = vpack.c.bf16 %v1439_v51, %v1431_v44 }
 0x137   :  { %1375 = vmatprep.subr.bf16.mxu0 %v1374_v52 }
 0x138   :  { %1383 = vmatprep.subr.bf16.mxu1 %v1382_v53  ;;  %1377 = vmatpush1.bf16.msra.mxu0 %v1376_v48 }
 0x139   :  { %1385 = vmatpush1.bf16.msra.mxu1 %v1384_v50 }
 0x13b   :  { %1178 = vmatmul.mubr.msk.f32.vlgmr.msra.gmra.mrb[8].mxu0 %vm531_vm2, %v503_v54 }
 0x13c   :  { %1182 = vmatmul.mubr.msk.f32.vlgmr.msra.gmra.mrb[8].mxu1 %vm531_vm2, %v503_v54  ;;  %614 = vmatprep.mubr.f32.mxu0 %v1529_v47 }
 0x13d   :  { %703 = vmatprep.mubr.f32.mxu1 %v1529_v47 }
 0x13f   :  { %1179 = vmatmul.mubr.msk.f32.gmra.mrb[10].mxu0 %vm531_vm2, %v504_v55 }
 0x140   :  { %1183 = vmatmul.mubr.msk.f32.gmra.mrb[10].mxu1 %vm531_vm2, %v504_v55  ;;  %620 = vmatprep.mubr.f32.mxu0 %v1529_v47  ;;  %v738_v55 = vld [vmem:[%s1963_s1 + $0x80] sm:$0xff] }
 0x141   :  { %709 = vmatprep.mubr.f32.mxu1 %v1529_v47 }
 0x143   :  { %1180 = vmatmul.mubr.msk.f32.gmra.mrb[12].mxu0 %vm531_vm2, %v505_v4 }
 0x144   :  { %1184 = vmatmul.mubr.msk.f32.gmra.mrb[12].mxu1 %vm531_vm2, %v505_v4  ;;  %626 = vmatprep.mubr.f32.mxu0 %v1529_v47  ;;  %v739_v4 = vld [vmem:[%s1963_s1 + $0x88] sm:$0xff] }
 0x145   :  { %715 = vmatprep.mubr.f32.mxu1 %v1529_v47 }
 0x147   :  { %1181 = vmatmul.mubr.msk.f32.gmra.mrb[14].mxu0 %vm531_vm2, %v506_v56 }
 0x148   :  { %1185 = vmatmul.mubr.msk.f32.gmra.mrb[14].mxu1 %vm531_vm2, %v506_v56  ;;  %842 = vmatprep.mubr.f32.mxu0 %v1529_v47  ;;  %v740_v56 = vld [vmem:[%s1963_s1 + $0x90] sm:$0xff] }
 0x149   :  { %931 = vmatprep.mubr.f32.mxu1 %v1529_v47 }
 0x20e   :  { %v610_v58 = vpop.f32.mrb[8].mxu0 }
 0x20f   :  { %v611_v59 = vadd.f32 %v610_v58, %v514_v57  ;;  %v699_v60 = vpop.f32.mrb[8].mxu1  ;;  %v612_v61 = vpop.f32.mrb[9].mxu0 }
 0x210   :  { %v700_v62 = vadd.f32 %v699_v60, %v514_v57  ;;  %v613_v63 = vadd.f32 %v612_v61, %v514_v57  ;;  %v701_v0 = vpop.f32.mrb[9].mxu1  ;;  %v749_v58 = vpop.permute.xlu0 %748 }
 0x211   :  { %1440 = vtanh.f32 %v611_v59  ;;  %v702_v1 = vadd.f32 %v701_v0, %v514_v57  ;;  %v741_v57 = vld [vmem:[%s1963_s1 + $0x98] sm:$0xff]  ;;  %s1531_s1 = smov [#allocation2]  }
 0x212   :  { %1442 = vtanh.f32 %v700_v62  ;;  %v616_v3 = vpop.f32.mrb[10].mxu0  ;;  %s1098_s26 = sshll.u32 %s1531_s1, 4  ;;  %s1099_s26 = int_to_ptr.vmem [resolvable:$true] %s1098_s26 }
 0x213   :  { %1444 = vtanh.f32 %v613_v63  ;;  %v617_v5 = vadd.f32 %v616_v3, %v519_v2  ;;  %v705_v6 = vpop.f32.mrb[10].mxu1  ;;  %v618_v7 = vpop.f32.mrb[11].mxu0  ;;  %s1504_s27 = scalar_lea.vmem %s1099_s26, 64  ;;  %p1509_p1 = scmp.lt.s32.totalorder %s1099_s26, %s1099_s26 }
 0x214   :  { %1446 = vtanh.f32 %v702_v1  ;;  %v706_v8 = vadd.f32 %v705_v6, %v519_v2  ;;  %v619_v9 = vadd.f32 %v618_v7, %v519_v2  ;;  %v707_v10 = vpop.f32.mrb[11].mxu1  ;;  %v754_v3 = vpop.permute.xlu1 %753  ;;  %p1505_p0 = scmp.ne.s32.totalorder %s1099_s26, %s1504_s27  ;;  %p1510_p2 = scmp.lt.s32.totalorder %s1504_s27, %s1504_s27 }
 0x215   :  { %1448 = vtanh.f32 %v617_v5  ;;  %v708_v11 = vadd.f32 %v707_v10, %v519_v2 }
 0x216   :  { %1450 = vtanh.f32 %v706_v8  ;;  %v622_v13 = vpop.f32.mrb[12].mxu0  ;;  %p1511_p3 = por %p1510_p2, %p1509_p1 }
 0x217   :  { %1452 = vtanh.f32 %v619_v9  ;;  %v623_v14 = vadd.f32 %v622_v13, %v524_v12  ;;  %v711_v15 = vpop.f32.mrb[12].mxu1  ;;  %v624_v16 = vpop.f32.mrb[13].mxu0 }
 0x218   :  { %1454 = vtanh.f32 %v708_v11  ;;  %v712_v17 = vadd.f32 %v711_v15, %v524_v12  ;;  %v625_v18 = vadd.f32 %v624_v16, %v524_v12  ;;  %v713_v19 = vpop.f32.mrb[13].mxu1  ;;  %p1512_p4 = pnand %p1511_p3, %p1505_p0 }
 0x219   :  { %1456 = vtanh.f32 %v623_v14  ;;  %v714_v20 = vadd.f32 %v713_v19, %v524_v12  ;;  %v759_v12 = vpop.permute.xlu0 %758 }
 0x21a   :  { %1458 = vtanh.f32 %v712_v17  ;;  %v628_v22 = vpop.f32.mrb[14].mxu0 }
 0x21b   :  { %v1441_v23 = vpop.eup %1440  ;;  %1460 = vtanh.f32 %v625_v18  ;;  %v629_v24 = vadd.f32 %v628_v22, %v529_v21  ;;  %v717_v25 = vpop.f32.mrb[14].mxu1 }
 0x21c   :  { %v630_v26 = vpop.f32.mrb[15].mxu0  ;;  %v1443_v27 = vpop.eup %1442  ;;  %1462 = vtanh.f32 %v714_v20  ;;  %v718_v28 = vadd.f32 %v717_v25, %v529_v21 }
 0x21d   :  { %v631_v29 = vadd.f32 %v630_v26, %v529_v21  ;;  %v719_v30 = vpop.f32.mrb[15].mxu1  ;;  %v1445_v31 = vpop.eup %1444  ;;  %1464 = vtanh.f32 %v629_v24 }
 0x21e   :  { %v720_v32 = vadd.f32 %v719_v30, %v529_v21  ;;  %v1447_v33 = vpop.eup %1446  ;;  %1466 = vtanh.f32 %v718_v28  ;;  %v764_v20 = vpop.permute.xlu1 %763 }
 0x21f   :  { %v1449_v34 = vpop.eup %1448  ;;  %1468 = vtanh.f32 %v631_v29 }
 0x220   :  { %v1451_v35 = vpop.eup %1450  ;;  %1470 = vtanh.f32 %v720_v32  ;;  %v1388_v36 = vpack.c.bf16 %v1449_v34, %v1441_v23  ;;  %v980_v32 = vpop.permute.xlu0 %979 }
 0x221   :  { %v1453_v37 = vpop.eup %1452  ;;  %v1396_v38 = vpack.c.bf16 %v1451_v35, %v1443_v27 }
 0x222   :  { %v1455_v39 = vpop.eup %1454  ;;  %v1386_v40 = vpack.c.bf16 %v1453_v37, %v1445_v31 }
 0x223   :  { %v1457_v41 = vpop.eup %1456  ;;  %v1394_v42 = vpack.c.bf16 %v1455_v39, %v1447_v33 }
 0x224   :  { %v1459_v43 = vpop.eup %1458  ;;  %1387 = vmatprep.subr.bf16.mxu0 %v1386_v40 }
 0x225   :  { %v1461_v44 = vpop.eup %1460  ;;  %1395 = vmatprep.subr.bf16.mxu1 %v1394_v42  ;;  %1389 = vmatpush1.bf16.msra.mxu0 %v1388_v36  ;;  %v985_v36 = vpop.permute.xlu1 %984 }
 0x226   :  { %v1463_v45 = vpop.eup %1462  ;;  %1397 = vmatpush1.bf16.msra.mxu1 %v1396_v38 }
 0x227   :  { %v1465_v46 = vpop.eup %1464 }
 0x228   :  { %v1467_v48 = vpop.eup %1466  ;;  %v1392_v49 = vpack.c.bf16 %v1465_v46, %v1457_v41 }
 0x229   :  { %v1469_v50 = vpop.eup %1468  ;;  %v1400_v51 = vpack.c.bf16 %v1467_v48, %v1459_v43 }
 0x22a   :  { %v1471_v52 = vpop.eup %1470  ;;  %v1390_v53 = vpack.c.bf16 %v1469_v50, %v1461_v44 }
 0x22b   :  { %v1398_v54 = vpack.c.bf16 %v1471_v52, %v1463_v45 }
 0x22c   :  { %1391 = vmatprep.subr.bf16.mxu0 %v1390_v53 }
 0x22d   :  { %1399 = vmatprep.subr.bf16.mxu1 %v1398_v54  ;;  %1393 = vmatpush1.bf16.msra.mxu0 %v1392_v49  ;;  %v990_v49 = vpop.permute.xlu0 %989 }
 0x22e   :  { %1401 = vmatpush1.bf16.msra.mxu1 %v1400_v51 }
 0x230   :  { %1186 = vmatmul.mubr.msk.f32.vlgmr.msra.gmra.mrb[16].mxu0 %vm531_vm2, %v738_v55 }
 0x231   :  { %1190 = vmatmul.mubr.msk.f32.vlgmr.msra.gmra.mrb[16].mxu1 %vm531_vm2, %v738_v55  ;;  %848 = vmatprep.mubr.f32.mxu0 %v1529_v47 }
 0x232   :  { %937 = vmatprep.mubr.f32.mxu1 %v1529_v47 }
 0x234   :  { %1187 = vmatmul.mubr.msk.f32.gmra.mrb[18].mxu0 %vm531_vm2, %v739_v4 }
 0x235   :  { %1191 = vmatmul.mubr.msk.f32.gmra.mrb[18].mxu1 %vm531_vm2, %v739_v4  ;;  %854 = vmatprep.mubr.f32.mxu0 %v1529_v47 }
 0x236   :  { %943 = vmatprep.mubr.f32.mxu1 %v1529_v47 }
 0x238   :  { %1188 = vmatmul.mubr.msk.f32.gmra.mrb[20].mxu0 %vm531_vm2, %v740_v56 }
 0x239   :  { %1192 = vmatmul.mubr.msk.f32.gmra.mrb[20].mxu1 %vm531_vm2, %v740_v56  ;;  %860 = vmatprep.mubr.f32.mxu0 %v1529_v47 }
 0x23a   :  { %949 = vmatprep.mubr.f32.mxu1 %v1529_v47 }
 0x23c   :  { %1189 = vmatmul.mubr.msk.f32.gmra.mrb[22].mxu0 %vm531_vm2, %v741_v57 }
 0x23d   :  { %1193 = vmatmul.mubr.msk.f32.gmra.mrb[22].mxu1 %vm531_vm2, %v741_v57 }
 0x303   :  { %v844_v59 = vpop.f32.mrb[16].mxu0 }
 0x304   :  { %v845_v60 = vadd.f32 %v844_v59, %v749_v58  ;;  %v933_v61 = vpop.f32.mrb[16].mxu1  ;;  %v846_v62 = vpop.f32.mrb[17].mxu0 }
 0x305   :  { %v934_v63 = vadd.f32 %v933_v61, %v749_v58  ;;  %v847_v0 = vadd.f32 %v846_v62, %v749_v58  ;;  %v935_v1 = vpop.f32.mrb[17].mxu1  ;;  %v995_v62 = vpop.permute.xlu1 %994 }
 0x306   :  { %1472 = vtanh.f32 %v845_v60  ;;  %v936_v2 = vadd.f32 %v935_v1, %v749_v58 }
 0x307   :  { %1474 = vtanh.f32 %v934_v63  ;;  %v850_v5 = vpop.f32.mrb[18].mxu0 }
 0x308   :  { %1476 = vtanh.f32 %v847_v0  ;;  %v851_v6 = vadd.f32 %v850_v5, %v754_v3  ;;  %v939_v47 = vpop.f32.mrb[18].mxu1  ;;  %v852_v7 = vpop.f32.mrb[19].mxu0 }
 0x309   :  { %1478 = vtanh.f32 %v936_v2  ;;  %v940_v8 = vadd.f32 %v939_v47, %v754_v3  ;;  %v853_v9 = vadd.f32 %v852_v7, %v754_v3  ;;  %v941_v10 = vpop.f32.mrb[19].mxu1 }
 0x30a   :  { %1480 = vtanh.f32 %v851_v6  ;;  %v942_v11 = vadd.f32 %v941_v10, %v754_v3 }
 0x30b   :  { %1482 = vtanh.f32 %v940_v8  ;;  %v856_v13 = vpop.f32.mrb[20].mxu0 }
 0x30c   :  { %1484 = vtanh.f32 %v853_v9  ;;  %v857_v14 = vadd.f32 %v856_v13, %v759_v12  ;;  %v945_v15 = vpop.f32.mrb[20].mxu1  ;;  %v858_v16 = vpop.f32.mrb[21].mxu0 }
 0x30d   :  { %1486 = vtanh.f32 %v942_v11  ;;  %v946_v17 = vadd.f32 %v945_v15, %v759_v12  ;;  %v859_v18 = vadd.f32 %v858_v16, %v759_v12  ;;  %v947_v19 = vpop.f32.mrb[21].mxu1 }
 0x30e   :  { %1488 = vtanh.f32 %v857_v14  ;;  %v948_v21 = vadd.f32 %v947_v19, %v759_v12 }
 0x30f   :  { %1490 = vtanh.f32 %v946_v17  ;;  %v862_v22 = vpop.f32.mrb[22].mxu0 }
 0x310   :  { %v1473_v23 = vpop.eup %1472  ;;  %1492 = vtanh.f32 %v859_v18  ;;  %v863_v24 = vadd.f32 %v862_v22, %v764_v20  ;;  %v951_v25 = vpop.f32.mrb[22].mxu1 }
 0x311   :  { %v864_v26 = vpop.f32.mrb[23].mxu0  ;;  %v1475_v27 = vpop.eup %1474  ;;  %1494 = vtanh.f32 %v948_v21  ;;  %v952_v28 = vadd.f32 %v951_v25, %v764_v20  ;;  %v997_v38 = vmul.f32 %v1473_v23, %v980_v32 }
 0x312   :  { %v865_v29 = vadd.f32 %v864_v26, %v764_v20  ;;  %v953_v30 = vpop.f32.mrb[23].mxu1  ;;  %v1477_v31 = vpop.eup %1476  ;;  %1496 = vtanh.f32 %v863_v24  ;;  %v999_v41 = vmul.f32 %v1475_v27, %v980_v32  ;;  %v1530_v26 = vmov 1966171168  }
 0x313   :  { %v954_v33 = vadd.f32 %v953_v30, %v764_v20  ;;  %v1479_v34 = vpop.eup %1478  ;;  %1498 = vtanh.f32 %v952_v28  ;;  %v998_v44 = vmul.f32 %v1477_v31, %v980_v32  ;;  %v1065_v27 = vunpack.c.l.s4 %v1530_v26 }
 0x314   :  { %v1481_v35 = vpop.eup %1480  ;;  %1500 = vtanh.f32 %v865_v29  ;;  %v1000_v50 = vmul.f32 %v1479_v34, %v980_v32  ;;  %v1067_v28 = vlaneseq }
 0x315   :  { %v1483_v37 = vpop.eup %1482  ;;  %v1001_v39 = vmul.f32 %v1481_v35, %v985_v36  ;;  %1502 = vtanh.f32 %v954_v33 }
 0x316   :  { %v1485_v40 = vpop.eup %1484  ;;  %v1003_v42 = vmul.f32 %v1483_v37, %v985_v36  ;;  %v1066_v37 = vunpack.c.0.s8 %v1065_v27  ;;  %vm1089_vm3 = vcmp.lt.s32.totalorder %v1067_v28, 512 }
 0x317   :  { %v1487_v43 = vpop.eup %1486  ;;  %v1013_v45 = vadd.f32 %v1001_v39, %v997_v38  ;;  %v1002_v46 = vmul.f32 %v1485_v40, %v985_v36  ;;  %v1068_v38 = vshrl.u32 %v1067_v28, 7  ;;  %v1052_v39 = vpop.permute.xlu0 %1051 }
 0x318   :  { %v1489_v48 = vpop.eup %1488  ;;  %v1031_v51 = vadd.f32 %v1003_v42, %v999_v41  ;;  %v1004_v52 = vmul.f32 %v1487_v43, %v985_v36 }
 0x319   :  { %v1491_v53 = vpop.eup %1490  ;;  %v1022_v54 = vadd.f32 %v1002_v46, %v998_v44  ;;  %v1005_v55 = vmul.f32 %v1489_v48, %v990_v49  ;;  %v1069_v48 = vsub.s32 %v1066_v37, %v1068_v38 }
 0x31a   :  { %v1493_v4 = vpop.eup %1492  ;;  %v1040_v56 = vadd.f32 %v1004_v52, %v1000_v50  ;;  %v1007_v57 = vmul.f32 %v1491_v53, %v990_v49 }
 0x31b   :  { %v1495_v58 = vpop.eup %1494  ;;  %v1014_v59 = vadd.f32 %v1013_v45, %v1005_v55  ;;  %v1006_v60 = vmul.f32 %v1493_v4, %v990_v49 }
 0x31c   :  { %v1497_v61 = vpop.eup %1496  ;;  %v1032_v63 = vadd.f32 %v1031_v51, %v1007_v57  ;;  %v1008_v0 = vmul.f32 %v1495_v58, %v990_v49 }
 0x31d   :  { %v1499_v1 = vpop.eup %1498  ;;  %v1023_v2 = vadd.f32 %v1022_v54, %v1006_v60  ;;  %v1009_v3 = vmul.f32 %v1497_v61, %v995_v62 }
 0x31e   :  { %v1501_v5 = vpop.eup %1500  ;;  %v1041_v6 = vadd.f32 %v1040_v56, %v1008_v0  ;;  %v1011_v47 = vmul.f32 %v1499_v1, %v995_v62 }
 0x31f   :  { %v1503_v7 = vpop.eup %1502  ;;  %v1015_v8 = vadd.f32 %v1014_v59, %v1009_v3  ;;  %v1010_v9 = vmul.f32 %v1501_v5, %v995_v62 }
 0x320   :  { %v1033_v10 = vadd.f32 %v1032_v63, %v1011_v47  ;;  %v1012_v11 = vmul.f32 %v1503_v7, %v995_v62 }
 0x321   :  { %v1016_v12 = vrot.slane %v1015_v8, 4  ;;  %v1024_v13 = vadd.f32 %v1023_v2, %v1010_v9 }
 0x322   :  { %v1034_v14 = vrot.slane %v1033_v10, 4  ;;  %v1042_v15 = vadd.f32 %v1041_v6, %v1012_v11 }
 0x323   :  { %v1017_v16 = vadd.f32 %v1016_v12, %v1015_v8  ;;  %v1025_v17 = vrot.slane %v1024_v13, 4 }
 0x324   :  { %v1035_v18 = vadd.f32 %v1034_v14, %v1033_v10  ;;  %v1043_v19 = vrot.slane %v1042_v15, 4 }
 0x325   :  { %v1026_v20 = vadd.f32 %v1025_v17, %v1024_v13  ;;  %v1018_v21 = vrot.slane %v1017_v16, 2 }
 0x326   :  { %v1044_v22 = vadd.f32 %v1043_v19, %v1042_v15  ;;  %v1036_v23 = vrot.slane %v1035_v18, 2 }
 0x327   :  { %v1019_v24 = vadd.f32 %v1018_v21, %v1017_v16  ;;  %v1027_v25 = vrot.slane %v1026_v20, 2 }
 0x328   :  { %v1037_v29 = vadd.f32 %v1036_v23, %v1035_v18  ;;  %v1045_v30 = vrot.slane %v1044_v22, 2 }
 0x329   :  { %v1020_v31 = vrot.slane %v1019_v24, 1  ;;  %v1028_v32 = vadd.f32 %v1027_v25, %v1026_v20 }
 0x32a   :  { %v1038_v33 = vrot.slane %v1037_v29, 1  ;;  %v1046_v34 = vadd.f32 %v1045_v30, %v1044_v22 }
 0x32b   :  { %v1021_v35 = vadd.f32 %v1020_v31, %v1019_v24  ;;  %v1029_v36 = vrot.slane %v1028_v32, 1 }
 0x32c   :  { %v1039_v40 = vadd.f32 %v1038_v33, %v1037_v29  ;;  %v1047_v41 = vrot.slane %v1046_v34, 1 }
 0x32d   :  { %v1030_v42 = vadd.f32 %v1029_v36, %v1028_v32  ;;  %v1054_v43 = vadd.f32 %v1052_v39, %v1021_v35 }
 0x32e   :  { %v1048_v44 = vadd.f32 %v1047_v41, %v1046_v34  ;;  %v1056_v45 = vadd.f32 %v1052_v39, %v1039_v40 }
 0x32f   :  { %v1055_v46 = vadd.f32 %v1052_v39, %v1030_v42 }
 0x330   :  { %v1057_v49 = vadd.f32 %v1052_v39, %v1048_v44 }
 0x331   :  { %v1062_v50 = vcombine.low %v1054_v43, %v1055_v46 }
 0x332   :  { %v1063_v51 = vcombine.low %v1056_v45, %v1057_v49 }
 0x333   :  { %v1070_v52 = vrot.slane %v1062_v50, %v1069_v48 }
 0x334   :  { %v1077_v53 = vrot.slane %v1063_v51, %v1069_v48 }
 0x336   :  { %v1078_v54 = vcombine.low %v1070_v52, %v1077_v53 }
 0x338   :  { %v1085_v55 = vrot.slane %v1078_v54, %v1069_v48 }
 0x33a   :  { %1091 = vst.msk [vmem:[#allocation2] sm:$0xf] %vm1089_vm3, %v1085_v55 }
 0x33b   :  { %1515 = shalt.err (!%p1512_p4)
}
 0x33c   :  { %s1516_s30 = scalar_lea.hbm %s1964_s2, 64 }
 0x33d   :  { %p1517_p5 = scmp.ne.s32.totalorder %s1964_s2, %s1516_s30  ;;  %p1520_p6 = scmp.lt.u32.totalorder %s1516_s30, %s1964_s2 }
 0x33f   :  { %p1522_p7 = pnand %p1520_p6, %p1517_p5 }
 0x341   :  { %1525 = shalt.err (!%p1522_p7)
}
 0x342   :  { %1101 = dma.vmem_to_hbm [thread:$0]  %s1099_s26, 64, %s1964_s2, [#allocation3]  }
 0x343   :  { %1526 = dma.done.wait [#allocation3], 64  }
 0x344   :  { %1527 = vsyncadd [#allocation3], 4294967232 }
 0x345   :  { %1105 = vsyncpa [#allocation3], 1 }

</bundles_post_ra>
